<compile_context>
chip_gen: v7x
topology: tpu7x:2x2x1
jax: 0.10.0
libtpu: 0.0.40
codegen_flags: <defaults>
</compile_context>

<pallas_src>
import jax
import jax.numpy as jnp
from jax.experimental import pallas as pl
from jax.experimental.pallas import tpu as pltpu


def _round_up(x, m):
    return (x + m - 1) // m * m


# ---------------------------------------------------------------------------
# Kernel A: node-projection phase (single invocation, tiny).
#   One MXU pass: proj = nf @ [Wn | 0 | Ws | Wd] + [bn | 1 | 0 | be]
#                      = [hv | 1 | ps | pd+be]            (Vp, H+3)
#   Emits hv_ps1=(Vp,H+2) bf16, pdb=(Vp,1) bf16, and the tile-independent
#   softmax shift = leaky_relu(max(pd+be) + max(ps))  (upper bound of all edge logits).
# ---------------------------------------------------------------------------
def node_project_kernel(nf_ref, w_ref, b_ref, hvps_ref, pdb_ref, shift_ref):
    hp2 = hvps_ref.shape[1]                                   # H + 2
    proj = jnp.dot(nf_ref[...], w_ref[...],
                   preferred_element_type=jnp.float32) + b_ref[...]   # (Vp, H+3)
    hvps_ref[...] = proj[:, :hp2].astype(hvps_ref.dtype)      # [hv | 1 | ps]
    pdb_ref[...] = proj[:, hp2:].astype(pdb_ref.dtype)        # pd + be
    sh = jnp.max(proj[:, hp2:]) + jnp.max(proj[:, hp2 - 1:hp2])
    sh = jnp.where(sh > 0.0, sh, 0.01 * sh)                   # LeakyReLU(0.01) is monotone
    shift_ref[...] = jnp.reshape(sh, (1, 1))


# ---------------------------------------------------------------------------
# Kernel B: per-edge phase, tiled over E ("parallel").
#   Two bf16 ExV MXU passes per tile:
#     gath = S_tile @ [hv | 1 | ps]   -> (te, H+2)
#     pdb  = D_tile @ (pd + be)       -> (te, 1)
#   logit = leaky(pdb + ps_src);  ex = exp(logit - shift)  (<= 1 for real edges)
#   msg_aug = ex * [hv_src | 1] = [ex*hv_src | ex]          -> (te, H+1) bf16
# ---------------------------------------------------------------------------
def edge_message_kernel(s_ref, d_ref, hvps_ref, pdb_ref, shift_ref, msg_ref):
    hp1 = msg_ref.shape[1]                                    # H + 1
    gath = jnp.dot(s_ref[...], hvps_ref[...],
                   preferred_element_type=jnp.float32)        # (te, H+2) = [hv_src | 1 | ps_src]
    pdb = jnp.dot(d_ref[...], pdb_ref[...],
                  preferred_element_type=jnp.float32)         # (te, 1)   = pd[dst] + be
    logit = pdb + gath[:, hp1:]                               # (te, 1)
    logit = jnp.where(logit > 0, logit, 0.01 * logit)         # LeakyReLU(0.01)
    ex = jnp.exp(logit - shift_ref[...])                      # (te, 1)
    # Padded edges: S/D rows are all-zero -> gath "ones" column is 0 -> msg row is 0; A also
    # ignores them, so they contribute nothing.
    msg_ref[...] = (ex * gath[:, :hp1]).astype(msg_ref.dtype)


# ---------------------------------------------------------------------------
# Kernel C: per-destination-node phase, tiled over V ("parallel").
#   ONE bf16 scatter matmul: cagg = A_tile @ msg_aug -> (tv, H+1); column H is the softmax denom.
#   normalize -> ELU -> fused single-matmul GRUCell -> ReLU.
# ---------------------------------------------------------------------------
def scatter_gru_kernel(a_ref, nf_ref, msg_ref, wg_ref, bg_ref, out_ref):
    hdim = msg_ref.shape[1] - 1                               # H
    fn = out_ref.shape[1]                                     # Fn

    cagg = jnp.dot(a_ref[...], msg_ref[...],
                   preferred_element_type=jnp.float32)        # (tv, H+1)
    denom = cagg[:, hdim:]                                    # sum of exp numerators
    denom = jnp.where(denom <= 0.0, jnp.float32(1.0), denom)  # isolated (zero in-degree) nodes
    c = cagg[:, :hdim] * pl.reciprocal(denom, approx=True)    # EUP, error << bf16 rounding
    context = jnp.where(c > 0, c, jnp.exp(c) - 1.0)           # ELU

    # ---- GRUCell(context, h): one lane-dense (tv, H+Fn) @ (H+Fn, 4*Fn) matmul -----------------
    h = nf_ref[...]                                           # (tv, Fn)
    ch = jnp.concatenate([context, h], axis=-1)               # (tv, H+Fn)
    g = jnp.dot(ch, wg_ref[...],
                preferred_element_type=jnp.float32) + bg_ref[...]      # (tv, 4*Fn) = 128 lanes
    r = jax.nn.sigmoid(g[:, :fn])
    z = jax.nn.sigmoid(g[:, fn:2 * fn])
    n = jnp.tanh(g[:, 2 * fn:3 * fn] + r * g[:, 3 * fn:4 * fn])
    h_new = (1.0 - z) * n + z * h
    out_ref[...] = jnp.maximum(h_new, 0.0)                    # F.relu


# ---------------------------------------------------------------------------
# Wrapper
# ---------------------------------------------------------------------------
def gnn_layer(src, dst, node_feats, params, *, tile_v=128, tile_e=256):
    """src/dst: (E,) int32 edge endpoints; node_feats: (V, Fn) f32. Returns (V, Fn) f32.

    tile_v: 128 is safe everywhere (v5e MXU is 4x128^2); prefer 256 on v6e/v7x.
    tile_e: multiple of 256 (v6e MXU K alignment of the scatter matmul).
    """
    V, Fn = node_feats.shape
    E = src.shape[0]
    H = params["Wn"].shape[1]

    # Pad V/E so every tile is full (zero rows/cols are exact for the 0/1 operators).
    Vp = _round_up(V, tile_v)
    Ep = _round_up(E, max(tile_e, 256))
    assert Ep % tile_e == 0 and Vp % tile_v == 0

    nf_p = jnp.zeros((Vp, Fn), jnp.float32).at[:V, :].set(node_feats)

    # Dense one-hot graph operators, all bf16 (exact 0/1) -> bf16 MXU gathers/scatter.
    e_idx = jnp.arange(E)
    S = jnp.zeros((Ep, Vp), jnp.bfloat16).at[e_idx, src].set(1.0)
    D = jnp.zeros((Ep, Vp), jnp.bfloat16).at[e_idx, dst].set(1.0)
    A = jnp.zeros((Vp, Ep), jnp.bfloat16).at[dst, e_idx].set(1.0)

    # project_edge Linear(2Fn -> 1) decomposed over the [dst | src] concatenation; the bias is
    # folded into the pd column so the edge kernel needs no separate bias operand.
    Wd = params["W_edge"][:Fn]                                # (Fn, 1) dst half
    Ws = params["W_edge"][Fn:]                                # (Fn, 1) src half
    be = params["b_edge"].reshape(1, 1)
    Wn, bn = params["Wn"], params["bn"]
    W_node = jnp.concatenate([Wn, jnp.zeros((Fn, 1), jnp.float32), Ws, Wd], axis=1)   # (Fn, H+3)
    b_node = jnp.concatenate([bn, jnp.ones((1, 1), jnp.float32),
                              jnp.zeros((1, 1), jnp.float32), be], axis=1)            # (1, H+3)

    # GRUCell weights fused into one (H+Fn, 4*Fn) block:
    #   columns [r | z | i_n | h_n]; r/z rows stack Wih over Whh; i_n/h_n are block-diagonal.
    Wih, Whh = params["Wih"], params["Whh"]                   # (H, 3Fn), (Fn, 3Fn)
    bih, bhh = params["bih"], params["bhh"]                   # (1, 3Fn)
    W_big = jnp.concatenate([
        jnp.concatenate([Wih[:, :Fn], Wih[:, Fn:2 * Fn], Wih[:, 2 * Fn:],
                         jnp.zeros((H, Fn), jnp.float32)], axis=1),
        jnp.concatenate([Whh[:, :Fn], Whh[:, Fn:2 * Fn],
                         jnp.zeros((Fn, Fn), jnp.float32), Whh[:, 2 * Fn:]], axis=1),
    ], axis=0)                                                # (H+Fn, 4*Fn)
    b_big = jnp.concatenate([bih[:, :Fn] + bhh[:, :Fn],
                             bih[:, Fn:2 * Fn] + bhh[:, Fn:2 * Fn],
                             bih[:, 2 * Fn:], bhh[:, 2 * Fn:]], axis=1)                # (1, 4*Fn)

    vmem = pl.BlockSpec(memory_space=pltpu.MemorySpace.VMEM)
    VMEM_LIMIT = 48 * 1024 * 1024                             # <= safe on v7x's 64 MiB

    # ---- phase A: node projection (single small invocation) --------------------------------
    hvps, pdb, shift = pl.pallas_call(
        node_project_kernel,
        out_shape=(jax.ShapeDtypeStruct((Vp, H + 2), jnp.bfloat16),
                   jax.ShapeDtypeStruct((Vp, 1), jnp.bfloat16),
                   jax.ShapeDtypeStruct((1, 1), jnp.float32)),
        in_specs=[vmem, vmem, vmem],
        out_specs=(vmem, vmem, vmem),
        compiler_params=pltpu.CompilerParams(vmem_limit_bytes=VMEM_LIMIT),
    )(nf_p, W_node, b_node)

    # ---- phase B: per-edge messages, E-tiled ------------------------------------------------
    msg = pl.pallas_call(
        edge_message_kernel,
        out_shape=jax.ShapeDtypeStruct((Ep, H + 1), jnp.bfloat16),
        grid=(Ep // tile_e,),
        in_specs=[
            pl.BlockSpec((tile_e, Vp), lambda e: (e, 0)),     # S tile (bf16)
            pl.BlockSpec((tile_e, Vp), lambda e: (e, 0)),     # D tile (bf16)
            pl.BlockSpec((Vp, H + 2), lambda e: (0, 0)),      # [hv | 1 | ps]
            pl.BlockSpec((Vp, 1), lambda e: (0, 0)),          # pd + be
            pl.BlockSpec((1, 1), lambda e: (0, 0)),           # softmax shift
        ],
        out_specs=pl.BlockSpec((tile_e, H + 1), lambda e: (e, 0)),
        compiler_params=pltpu.CompilerParams(
            dimension_semantics=("parallel",),                # megacore / v7x 2-TC split over E
            vmem_limit_bytes=VMEM_LIMIT),
    )(S, D, hvps, pdb, shift)

    # ---- phase C: V-tiled scatter + fused GRU -------------------------------------------------
    out_p = pl.pallas_call(
        scatter_gru_kernel,
        out_shape=jax.ShapeDtypeStruct((Vp, Fn), jnp.float32),
        grid=(Vp // tile_v,),
        in_specs=[
            pl.BlockSpec((tile_v, Ep), lambda i: (i, 0)),     # A tile (bf16)
            pl.BlockSpec((tile_v, Fn), lambda i: (i, 0)),     # node_feats tile (GRU hidden state)
            pl.BlockSpec((Ep, H + 1), lambda i: (0, 0)),      # msg_aug = [exp*hv_src | exp]
            pl.BlockSpec((H + Fn, 4 * Fn), lambda i: (0, 0)), # fused GRU weight
            pl.BlockSpec((1, 4 * Fn), lambda i: (0, 0)),      # fused GRU bias
        ],
        out_specs=pl.BlockSpec((tile_v, Fn), lambda i: (i, 0)),
        compiler_params=pltpu.CompilerParams(
            dimension_semantics=("parallel",),                # megacore / v7x 2-TC split over V
            vmem_limit_bytes=VMEM_LIMIT),
    )(A, nf_p, msg, W_big, b_big)

    return out_p[:V]


# ---------------------------------------------------------------------------
# Pure-JAX reference (index-based, all f32, per-dst softmax) of the PyTorch forward.
# ---------------------------------------------------------------------------
def reference_jax(src, dst, node_feats, params):
    V, Fn = node_feats.shape
    he = jnp.concatenate([node_feats[dst], node_feats[src]], axis=1)          # (E, 2Fn)
    logits = he @ params["W_edge"] + params["b_edge"].reshape(1, 1)           # (E, 1)
    logits = jnp.where(logits > 0, logits, 0.01 * logits)                     # LeakyReLU
    l = logits[:, 0]
    lmax = jax.ops.segment_max(l, dst, num_segments=V)                        # (V,)
    ex = jnp.exp(l - lmax[dst])
    denom = jax.ops.segment_sum(ex, dst, num_segments=V)
    a = ex / denom[dst]                                                       # edge_softmax
    hv = node_feats @ params["Wn"] + params["bn"]                             # project_node
    m = a[:, None] * hv[src]                                                  # src_mul_edge
    c = jax.ops.segment_sum(m, dst, num_segments=V)                           # sum -> (V, H)
    context = jnp.where(c > 0, c, jnp.exp(c) - 1.0)                           # ELU
    h = node_feats
    gi = context @ params["Wih"] + params["bih"]
    gh = h @ params["Whh"] + params["bhh"]
    r = jax.nn.sigmoid(gi[:, :Fn] + gh[:, :Fn])
    z = jax.nn.sigmoid(gi[:, Fn:2 * Fn] + gh[:, Fn:2 * Fn])
    n = jnp.tanh(gi[:, 2 * Fn:] + r * gh[:, 2 * Fn:])
    h_new = (1.0 - z) * n + z * h
    return jnp.maximum(h_new, 0.0)


if __name__ == "__main__":
    # Small batched molecular graph: V nodes, E directed edges.
    V, E = 64, 256
    node_feat_size = 32      # Fn
    graph_feat_size = 32     # H (edge_hidden_size inside AttentiveGRU2)

    key = jax.random.PRNGKey(0)
    ks = jax.random.split(key, 11)

    src = jax.random.randint(ks[0], (E,), 0, V)
    dst = jax.random.randint(ks[1], (E,), 0, V)
    node_feats = jax.random.normal(ks[2], (V, node_feat_size), jnp.float32)

    Fn, H = node_feat_size, graph_feat_size
    params = {
        # project_edge: Linear(2*Fn, 1) (weight already transposed), LeakyReLU after
        "W_edge": 0.1 * jax.random.normal(ks[3], (2 * Fn, 1), jnp.float32),
        "b_edge": 0.1 * jax.random.normal(ks[4], (1, 1), jnp.float32),
        # project_node: Linear(Fn, H)
        "Wn": 0.1 * jax.random.normal(ks[5], (Fn, H), jnp.float32),
        "bn": 0.1 * jax.random.normal(ks[6], (1, H), jnp.float32),
        # GRUCell(H, Fn): weights transposed, gate order [r, z, n]
        "Wih": 0.1 * jax.random.normal(ks[7], (H, 3 * Fn), jnp.float32),
        "Whh": 0.1 * jax.random.normal(ks[8], (Fn, 3 * Fn), jnp.float32),
        "bih": 0.1 * jax.random.normal(ks[9], (1, 3 * Fn), jnp.float32),
        "bhh": 0.1 * jax.random.normal(ks[10], (1, 3 * Fn), jnp.float32),
    }

    out = gnn_layer(src, dst, node_feats, params, tile_v=128, tile_e=256)
    out = jax.block_until_ready(out)

    ref = reference_jax(src, dst, node_feats, params)
    assert out.shape == (V, node_feat_size)
    # Tolerance relaxed vs 1e-5: the dominant one-hot gathers/scatter and the per-edge
    # numerators run with bf16 operands (per perf review); accumulation stays f32.
    max_err = float(jnp.max(jnp.abs(out - ref)))
    assert jnp.allclose(out, ref, atol=3e-2, rtol=3e-2), \
        f"mismatch vs reference (max abs err {max_err})"

    print("KERNEL_OK")
</pallas_src>

<mosaic_0001>
module attributes {stable_mosaic.version = 11 : i64} {
  func.func @node_project_kernel(%arg0: memref<128x32xf32, #tpu.memory_space<vmem>>, %arg1: memref<32x35xf32, #tpu.memory_space<vmem>>, %arg2: memref<1x35xf32, #tpu.memory_space<vmem>>, %arg3: memref<128x34xbf16, #tpu.memory_space<vmem>>, %arg4: memref<128x1xbf16, #tpu.memory_space<vmem>>, %arg5: memref<1x1xf32, #tpu.memory_space<vmem>>) attributes {dimension_semantics = [], scalar_prefetch = 0 : i64, scratch_operands = 0 : i64, tpu.core_type = #tpu.core_type<tc>} {
    %c0 = arith.constant 0 : index
    %c0_0 = arith.constant 0 : index
    %0 = vector.load %arg0[%c0, %c0_0] : memref<128x32xf32, #tpu.memory_space<vmem>>, vector<128x32xf32>
    %c0_1 = arith.constant 0 : index
    %c0_2 = arith.constant 0 : index
    %1 = vector.load %arg1[%c0_1, %c0_2] : memref<32x35xf32, #tpu.memory_space<vmem>>, vector<32x35xf32>
    %cst = arith.constant dense<0.000000e+00> : vector<128x35xf32>
    %2 = tpu.matmul %0, %1, %cst {dimension_numbers = #tpu.dot_dimension_numbers<[1], [0], [0], [1], [0, 0, 1, 1], [], []>} : vector<128x32xf32>, vector<32x35xf32>, vector<128x35xf32> -> vector<128x35xf32>
    %c0_3 = arith.constant 0 : index
    %c0_4 = arith.constant 0 : index
    %3 = vector.load %arg2[%c0_3, %c0_4] : memref<1x35xf32, #tpu.memory_space<vmem>>, vector<1x35xf32>
    %4 = vector.broadcast %3 : vector<1x35xf32> to vector<128x35xf32>
    %5 = arith.addf %2, %4 : vector<128x35xf32>
    %6 = vector.extract_strided_slice %5 {offsets = [0, 0], sizes = [128, 34], strides = [1, 1]} : vector<128x35xf32> to vector<128x34xf32>
    %7 = arith.truncf %6 : vector<128x34xf32> to vector<128x34xbf16>
    %c0_5 = arith.constant 0 : index
    %c0_6 = arith.constant 0 : index
    %8 = vector.load %arg3[%c0_5, %c0_6] : memref<128x34xbf16, #tpu.memory_space<vmem>>, vector<128x34xbf16>
    tpu.vector_store %arg3[%c0_5, %c0_6], %7 {strides = array<i32>} : memref<128x34xbf16, #tpu.memory_space<vmem>>, vector<128x34xbf16>,
    %9 = vector.extract_strided_slice %5 {offsets = [0, 34], sizes = [128, 1], strides = [1, 1]} : vector<128x35xf32> to vector<128x1xf32>
    %10 = arith.truncf %9 : vector<128x1xf32> to vector<128x1xbf16>
    %c0_7 = arith.constant 0 : index
    %c0_8 = arith.constant 0 : index
    %11 = vector.load %arg4[%c0_7, %c0_8] : memref<128x1xbf16, #tpu.memory_space<vmem>>, vector<128x1xbf16>
    tpu.vector_store %arg4[%c0_7, %c0_8], %10 {strides = array<i32>} : memref<128x1xbf16, #tpu.memory_space<vmem>>, vector<128x1xbf16>,
    %12 = vector.extract_strided_slice %5 {offsets = [0, 34], sizes = [128, 1], strides = [1, 1]} : vector<128x35xf32> to vector<128x1xf32>
    %13 = vector.shape_cast %12 : vector<128x1xf32> to vector<1x128x1xf32>
    %cst_9 = arith.constant dense<0xFF800000> : vector<1xf32>
    %14 = vector.multi_reduction <maximumf>, %13, %cst_9 [1, 2] : vector<1x128x1xf32> to vector<1xf32>
    %15 = vector.shape_cast %14 : vector<1xf32> to vector<1x1x1xf32>
    %16 = vector.extract %15[0, 0, 0] : f32 from vector<1x1x1xf32>
    %17 = vector.extract_strided_slice %5 {offsets = [0, 33], sizes = [128, 1], strides = [1, 1]} : vector<128x35xf32> to vector<128x1xf32>
    %18 = vector.shape_cast %17 : vector<128x1xf32> to vector<1x128x1xf32>
    %cst_10 = arith.constant dense<0xFF800000> : vector<1xf32>
    %19 = vector.multi_reduction <maximumf>, %18, %cst_10 [1, 2] : vector<1x128x1xf32> to vector<1xf32>
    %20 = vector.shape_cast %19 : vector<1xf32> to vector<1x1x1xf32>
    %21 = vector.extract %20[0, 0, 0] : f32 from vector<1x1x1xf32>
    %22 = arith.addf %16, %21 : f32
    %cst_11 = arith.constant 0.000000e+00 : f32
    %23 = arith.cmpf ogt, %22, %cst_11 : f32
    %cst_12 = arith.constant 0.00999999977 : f32
    %24 = arith.mulf %cst_12, %22 : f32
    %25 = arith.select %23, %22, %24 : f32
    %26 = vector.broadcast %25 : f32 to vector<1x1xf32>
    %c0_13 = arith.constant 0 : index
    %c0_14 = arith.constant 0 : index
    %27 = vector.load %arg5[%c0_13, %c0_14] : memref<1x1xf32, #tpu.memory_space<vmem>>, vector<1x1xf32>
    tpu.vector_store %arg5[%c0_13, %c0_14], %26 {strides = array<i32>} : memref<1x1xf32, #tpu.memory_space<vmem>>, vector<1x1xf32>,
    return
  }
}

</mosaic_0001>

<bundles_post_ra>
// kernel: tpu_custom_call.1
= control target key start
LH: loop header
LB: loop body
LE: loop exit
PB: predicated region body
PF: predicated region fallthrough
CT: control target
= control target key end

     0   :  { %vm45_vm0 = vcmask 261120   ;;  %s1033_s0 = inlined_call_operand.vmem [shape: f32[128,32], index: 0, kind: input, shape index: {}]   ;;  %s1034_s1 = inlined_call_operand.vmem [shape: f32[32,35], index: 1, kind: input, shape index: {}]   ;;  %s1035_s2 = inlined_call_operand.vmem [shape: f32[1,35], index: 2, kind: input, shape index: {}]   ;;  %s1036_s3 = inlined_call_operand.vmem [shape: bf16[128,34], index: 3, kind: output, shape index: {0}]   ;;  %s1037_s4 = inlined_call_operand.vmem [shape: bf16[128,1], index: 4, kind: output, shape index: {1}]   ;;  %s1038_s5 = inlined_call_operand.hbm [shape: f32[1,1], index: 5, kind: output, shape index: {2}]  }
   0x1   :  { %v34_v0 = vld [vmem:[%s1034_s1] sm:$0xff]  ;;  %v35_v1 = vld [vmem:[%s1034_s1 + $0x8] sm:$0xff]  ;;  %v36_v2 = vld [vmem:[%s1034_s1 + $0x10] sm:$0xff] }
   0x2   :  { %v597_v3 = vpack.c.bf16 %v35_v1, %v34_v0  ;;  %v37_v4 = vld [vmem:[%s1034_s1 + $0x18] sm:$0xff]  ;;  %v18_v5 = vld [vmem:[%s1033_s0] sm:$0xff] }
   0x3   :  { %v601_v6 = vpack.c.bf16 %v37_v4, %v36_v2  ;;  %573 = vmatprep.mubr.msk.f32.mxu0 %vm45_vm0, %v18_v5  ;;  %v26_v7 = vld [vmem:[%s1033_s0 + $0x40] sm:$0xff] }
   0x4   :  { %598 = vmatprep.subr.bf16.mxu0 %v597_v3  ;;  %605 = vmatprep.subr.bf16.mxu1 %v597_v3 }
   0x5   :  { %600 = vmatpush3.bf16.msra.mxu0 %v597_v3  ;;  %607 = vmatpush3.bf16.msra.mxu1 %v597_v3 }
   0x6   :  { %602 = vmatprep.subr.bf16.mxu0 %v601_v6  ;;  %606 = vmatprep.subr.bf16.mxu1 %v601_v6 }
   0x7   :  { %585 = vmatprep.mubr.msk.f32.mxu1 %vm45_vm0, %v26_v7 }
   0x8   :  { %11 = vsyncpa [#allocation3], 0  ;;  %v19_v8 = vld [vmem:[%s1033_s0 + $0x8] sm:$0xff]  ;;  %v20_v10 = vld [vmem:[%s1033_s0 + $0x10] sm:$0xff]  ;;  %vm385_vm1 = vcmask 285968   ;;  %vm426_vm2 = vcmask 277768  }
   0x9   :  { %604 = vmatpush3.bf16.msra.mxu0 %v601_v6  ;;  %608 = vmatpush3.bf16.msra.mxu1 %v601_v6  ;;  %v27_v9 = vld [vmem:[%s1033_s0 + $0x48] sm:$0xff]  ;;  %v28_v11 = vld [vmem:[%s1033_s0 + $0x50] sm:$0xff]  ;;  %v21_v12 = vld [vmem:[%s1033_s0 + $0x18] sm:$0xff]  ;;  %vm303_vm3 = vcmask 273408   ;;  %vm368_vm4 = vcmask 3072   ;;  %vm472_vm5 = vcmask 0  }
   0xa   :  { %v29_v13 = vld [vmem:[%s1033_s0 + $0x58] sm:$0xff]  ;;  %v22_v14 = vld [vmem:[%s1033_s0 + $0x20] sm:$0xff]  ;;  %v23_v16 = vld [vmem:[%s1033_s0 + $0x28] sm:$0xff] }
   0xb   :  { %v30_v15 = vld [vmem:[%s1033_s0 + $0x60] sm:$0xff]  ;;  %v31_v17 = vld [vmem:[%s1033_s0 + $0x68] sm:$0xff]  ;;  %v24_v18 = vld [vmem:[%s1033_s0 + $0x30] sm:$0xff] }
   0xc   :  { %574 = vmatmul.mubr.msk.f32.vlgmr.msra.gmra.mrb[0].mxu0 %vm45_vm0, %v19_v8  ;;  %586 = vmatmul.mubr.msk.f32.vlgmr.msra.gmra.mrb[0].mxu1 %vm45_vm0, %v27_v9  ;;  %v32_v19 = vld [vmem:[%s1033_s0 + $0x70] sm:$0xff]  ;;  %v25_v20 = vld [vmem:[%s1033_s0 + $0x38] sm:$0xff]  ;;  %v750_v22 = vld [vmem:[%s1035_s2] ss:$0 sm:$0xff] }
   0xd   :  { %576 = vmatprep.mubr.msk.f32.mxu0 %vm45_vm0, %v20_v10  ;;  %588 = vmatprep.mubr.msk.f32.mxu1 %vm45_vm0, %v28_v11  ;;  %v33_v21 = vld [vmem:[%s1033_s0 + $0x78] sm:$0xff]  ;;  %s639_s0 = smov 94  }
  0x10   :  { %577 = vmatmul.mubr.msk.f32.gmra.mrb[2].mxu0 %vm45_vm0, %v21_v12  ;;  %589 = vmatmul.mubr.msk.f32.gmra.mrb[2].mxu1 %vm45_vm0, %v29_v13 }
  0x11   :  { %579 = vmatprep.mubr.msk.f32.mxu0 %vm45_vm0, %v22_v14  ;;  %591 = vmatprep.mubr.msk.f32.mxu1 %vm45_vm0, %v30_v15 }
  0x14   :  { %580 = vmatmul.mubr.msk.f32.gmra.mrb[4].mxu0 %vm45_vm0, %v23_v16  ;;  %592 = vmatmul.mubr.msk.f32.gmra.mrb[4].mxu1 %vm45_vm0, %v31_v17 }
  0x15   :  { %582 = vmatprep.mubr.msk.f32.mxu0 %vm45_vm0, %v24_v18  ;;  %594 = vmatprep.mubr.msk.f32.mxu1 %vm45_vm0, %v32_v19 }
  0x18   :  { %583 = vmatmul.mubr.msk.f32.gmra.mrb[6].mxu0 %vm45_vm0, %v25_v20  ;;  %595 = vmatmul.mubr.msk.f32.gmra.mrb[6].mxu1 %vm45_vm0, %v33_v21 }
  0xdf   :  { %v575_v23 = vpop.f32.mrb[0].mxu0  ;;  %v587_v24 = vpop.f32.mrb[0].mxu1 }
  0xe0   :  { %v166_v25 = vadd.f32 %v575_v23, %v750_v22  ;;  %v160_v26 = vpop.f32.mrb[1].mxu0  ;;  %v206_v27 = vadd.f32 %v587_v24, %v750_v22  ;;  %v200_v28 = vpop.f32.mrb[1].mxu1 }
  0xe1   :  { %v161_v29 = vadd.f32 %v750_v22, %v160_v26  ;;  %v201_v30 = vadd.f32 %v750_v22, %v200_v28 }
  0xe2   :  { %v757_v31 = vsel %vm385_vm1, %v166_v25, -inf  ;;  %v760_v32 = vsel %vm426_vm2, %v166_v25, -inf  ;;  %v763_v33 = vsel %vm385_vm1, %v206_v27, -inf  ;;  %v766_v34 = vsel %vm426_vm2, %v206_v27, -inf }
  0xe3   :  { %v769_v35 = vsel %vm385_vm1, %v161_v29, -inf  ;;  %v772_v36 = vsel %vm426_vm2, %v161_v29, -inf  ;;  %v578_v37 = vpop.f32.mrb[2].mxu0  ;;  %v775_v38 = vsel %vm385_vm1, %v201_v30, -inf  ;;  %v778_v39 = vsel %vm426_vm2, %v201_v30, -inf  ;;  %v590_v40 = vpop.f32.mrb[2].mxu1 }
  0xe4   :  { %v176_v41 = vadd.f32 %v578_v37, %v750_v22  ;;  %v170_v42 = vpop.f32.mrb[3].mxu0  ;;  %v529_v43 = vpack.c.bf16 %v161_v29, %v161_v29  ;;  %v216_v44 = vadd.f32 %v590_v40, %v750_v22  ;;  %v210_v45 = vpop.f32.mrb[3].mxu1  ;;  %v530_v46 = vpack.c.bf16 %v166_v25, %v166_v25 }
  0xe5   :  { %v171_v47 = vadd.f32 %v750_v22, %v170_v42  ;;  %v211_v48 = vadd.f32 %v750_v22, %v210_v45  ;;  %v784_v49 = vpack.c.bf16 %v201_v30, %v201_v30  ;;  %v786_v50 = vpack.c.bf16 %v206_v27, %v206_v27 }
  0xe6   :  { %v789_v51 = vsel %vm385_vm1, %v176_v41, -inf  ;;  %v792_v52 = vsel %vm426_vm2, %v176_v41, -inf  ;;  %320 = vrot.lane.b32.xlu1 %v529_v43, %s639_s0  ;;  %304 = vst.msk [vmem:[%s1036_s3] sm:$0xf] %vm303_vm3, %v529_v43  ;;  %v404_v53 = vsel %vm385_vm1, %v216_v44, -inf  ;;  %v801_v54 = vsel %vm426_vm2, %v216_v44, -inf }
  0xe7   :  { %305 = vst.msk [vmem:[%s1036_s3 + $0x4] sm:$0xf] %vm303_vm3, %v530_v46  ;;  %v808_v55 = vsel %vm385_vm1, %v171_v47, -inf  ;;  %v811_v56 = vsel %vm426_vm2, %v171_v47, -inf  ;;  %v581_v57 = vpop.f32.mrb[4].mxu0  ;;  %v402_v58 = vsel %vm385_vm1, %v211_v48, -inf  ;;  %v532_v1 = vpack.c.bf16 %v176_v41, %v176_v41 }
  0xe8   :  { %v815_v59 = vsel %vm426_vm2, %v211_v48, -inf  ;;  %v593_v60 = vpop.f32.mrb[4].mxu1  ;;  %312 = vst.msk [vmem:[%s1036_s3 + $0x20] sm:$0xf] %vm303_vm3, %v784_v49  ;;  %313 = vst.msk [vmem:[%s1036_s3 + $0x24] sm:$0xf] %vm303_vm3, %v786_v50  ;;  %v186_v61 = vadd.f32 %v581_v57, %v750_v22  ;;  %v831_v2 = vpack.c.bf16 %v211_v48, %v211_v48  ;;  %v837_v5 = vpack.c.bf16 %v171_v47, %v171_v47 }
  0xe9   :  { %v180_v62 = vpop.f32.mrb[5].mxu0  ;;  %v829_v63 = vadd.f32 %v593_v60, %v750_v22  ;;  %v220_v0 = vpop.f32.mrb[5].mxu1  ;;  %v839_v6 = vpack.c.bf16 %v216_v44, %v216_v44  ;;  %307 = vst.msk [vmem:[%s1036_s3 + $0xc] sm:$0xf] %vm303_vm3, %v532_v1 }
  0xea   :  { %v181_v3 = vadd.f32 %v750_v22, %v180_v62  ;;  %v835_v4 = vadd.f32 %v750_v22, %v220_v0  ;;  %v392_v7 = vsel %vm385_vm1, %v186_v61, -inf  ;;  %v433_v8 = vsel %vm426_vm2, %v186_v61, -inf  ;;  %322 = vrot.lane.b32.xlu1 %v530_v46, %s639_s0  ;;  %314 = vst.msk [vmem:[%s1036_s3 + $0x28] sm:$0xf] %vm303_vm3, %v831_v2  ;;  %306 = vst.msk [vmem:[%s1036_s3 + $0x8] sm:$0xf] %vm303_vm3, %v837_v5 }
  0xeb   :  { %v846_v9 = vsel %vm426_vm2, %v829_v63, -inf  ;;  %v534_v10 = vpack.c.bf16 %v186_v61, %v186_v61  ;;  %v393_v11 = vmax.f32 %v757_v31, %v392_v7  ;;  %v434_v12 = vmax.f32 %v760_v32, %v433_v8  ;;  %v584_v15 = vpop.f32.mrb[6].mxu0  ;;  %v596_v16 = vpop.f32.mrb[6].mxu1  ;;  %315 = vst.msk [vmem:[%s1036_s3 + $0x2c] sm:$0xf] %vm303_vm3, %v839_v6 }
  0xec   :  { %v390_v13 = vsel %vm385_vm1, %v181_v3, -inf  ;;  %v431_v14 = vsel %vm426_vm2, %v181_v3, -inf  ;;  %v196_v19 = vadd.f32 %v584_v15, %v750_v22  ;;  %v447_v20 = vsel %vm426_vm2, %v835_v4, -inf  ;;  %v190_v21 = vpop.f32.mrb[7].mxu0  ;;  %v230_v23 = vpop.f32.mrb[7].mxu1 }
  0xed   :  { %v391_v17 = vmax.f32 %v769_v35, %v390_v13  ;;  %v432_v18 = vmax.f32 %v772_v36, %v431_v14  ;;  %309 = vst.msk [vmem:[%s1036_s3 + $0x14] sm:$0xf] %vm303_vm3, %v534_v10  ;;  %v191_v24 = vadd.f32 %v750_v22, %v190_v21  ;;  %v236_v25 = vadd.f32 %v596_v16, %v750_v22 }
  0xee   :  { %v231_v26 = vadd.f32 %v750_v22, %v230_v23  ;;  %v533_v27 = vpack.c.bf16 %v181_v3, %v181_v3  ;;  %v396_v28 = vsel %vm385_vm1, %v196_v19, -inf  ;;  %v437_v29 = vsel %vm426_vm2, %v196_v19, -inf  ;;  %326 = vrot.lane.b32.xlu1 %v532_v1, %s639_s0 }
  0xef   :  { %v399_v30 = vmax.f32 %v391_v17, %v775_v38  ;;  %v401_v31 = vmax.f32 %v393_v11, %v763_v33  ;;  %v397_v32 = vmax.f32 %v789_v51, %v396_v28  ;;  %v438_v35 = vmax.f32 %v792_v52, %v437_v29 }
  0xf0   :  { %v394_v36 = vsel %vm385_vm1, %v191_v24, -inf  ;;  %v435_v37 = vsel %vm426_vm2, %v191_v24, -inf  ;;  %308 = vst.msk [vmem:[%s1036_s3 + $0x10] sm:$0xf] %vm303_vm3, %v533_v27  ;;  %v453_v38 = vsel %vm426_vm2, %v236_v25, -inf  ;;  %v451_v33 = vsel %vm426_vm2, %v231_v26, -inf }
  0xf1   :  { %v395_v22 = vmax.f32 %v808_v55, %v394_v36  ;;  %v436_v40 = vmax.f32 %v811_v56, %v435_v37  ;;  %v535_v41 = vpack.c.bf16 %v191_v24, %v191_v24  ;;  %v405_v42 = vmax.f32 %v397_v32, %v404_v53 }
  0xf2   :  { %v406_v43 = vsel %vm385_vm1, %v835_v4, -inf  ;;  %v408_v44 = vsel %vm385_vm1, %v829_v63, -inf  ;;  %328 = vrot.lane.b32.xlu1 %v533_v27, %s639_s0  ;;  %v410_v48 = vsel %vm385_vm1, %v231_v26, -inf  ;;  %v412_v51 = vsel %vm385_vm1, %v236_v25, -inf }
  0xf3   :  { %v403_v45 = vmax.f32 %v395_v22, %v402_v58  ;;  %v407_v46 = vmax.f32 %v399_v30, %v406_v43  ;;  %v409_v47 = vmax.f32 %v401_v31, %v408_v44  ;;  %310 = vst.msk [vmem:[%s1036_s3 + $0x18] sm:$0xf] %vm303_vm3, %v535_v41  ;;  %v536_v52 = vpack.c.bf16 %v196_v19, %v196_v19 }
  0xf4   :  { %v440_v53 = vmax.f32 %v432_v18, %v778_v39  ;;  %v442_v55 = vmax.f32 %v434_v12, %v766_v34  ;;  %v413_v57 = vmax.f32 %v405_v42, %v412_v51  ;;  %v444_v58 = vmax.f32 %v436_v40, %v815_v59 }
  0xf5   :  { %v411_v56 = vmax.f32 %v403_v45, %v410_v48  ;;  %v414_v60 = vmax.f32 %v407_v46, %v409_v47  ;;  %311 = vst.msk [vmem:[%s1036_s3 + $0x1c] sm:$0xf] %vm303_vm3, %v536_v52  ;;  %v446_v61 = vmax.f32 %v438_v35, %v801_v54  ;;  %v541_v39 = vpack.c.bf16 %v835_v4, %v835_v4 }
  0xf6   :  { %v448_v62 = vmax.f32 %v440_v53, %v447_v20  ;;  %v450_v0 = vmax.f32 %v442_v55, %v846_v9  ;;  %330 = vrot.lane.b32.xlu1 %v534_v10, %s639_s0  ;;  %v452_v1 = vmax.f32 %v444_v58, %v451_v33  ;;  %v543_v3 = vpack.c.bf16 %v231_v26, %v231_v26 }
  0xf7   :  { %v415_v34 = vmax.f32 %v411_v56, %v413_v57  ;;  %v542_v59 = vpack.c.bf16 %v829_v63, %v829_v63  ;;  %v454_v7 = vmax.f32 %v446_v61, %v453_v38  ;;  %316 = vst.msk [vmem:[%s1036_s3 + $0x30] sm:$0xf] %vm303_vm3, %v541_v39  ;;  %v544_v54 = vpack.c.bf16 %v236_v25, %v236_v25 }
  0xf8   :  { %v455_v8 = vmax.f32 %v448_v62, %v450_v0  ;;  %318 = vst.msk [vmem:[%s1036_s3 + $0x38] sm:$0xf] %vm303_vm3, %v543_v3 }
  0xf9   :  { %v416_v9 = vmax.f32 %v414_v60, %v415_v34  ;;  %317 = vst.msk [vmem:[%s1036_s3 + $0x34] sm:$0xf] %vm303_vm3, %v542_v59  ;;  %v456_v63 = vmax.f32 %v452_v1, %v454_v7  ;;  %319 = vst.msk [vmem:[%s1036_s3 + $0x3c] sm:$0xf] %vm303_vm3, %v544_v54 }
  0xfa   :  { %332 = vrot.lane.b32.xlu1 %v535_v41, %s639_s0 }
  0xfb   :  { %417 = vmax.xlane.f32.xlu0 %v416_v9  ;;  %v457_v4 = vmax.f32 %v455_v8, %v456_v63 }
  0xfe   :  { %334 = vrot.lane.b32.xlu1 %v536_v52, %s639_s0 }
  0xff   :  { %458 = vmax.xlane.f32.xlu0 %v457_v4 }
 0x102   :  { %336 = vrot.lane.b32.xlu1 %v784_v49, %s639_s0 }
 0x106   :  { %340 = vrot.lane.b32.xlu1 %v831_v2, %s639_s0 }
 0x10a   :  { %344 = vrot.lane.b32.xlu1 %v541_v39, %s639_s0 }
 0x10e   :  { %348 = vrot.lane.b32.xlu1 %v543_v3, %s639_s0 }
 0x115   :  { %324 = vrot.lane.b32.xlu0 %v837_v5, %s639_s0 }
 0x119   :  { %338 = vrot.lane.b32.xlu0 %v786_v50, %s639_s0 }
 0x11d   :  { %342 = vrot.lane.b32.xlu0 %v839_v6, %s639_s0 }
 0x121   :  { %346 = vrot.lane.b32.xlu0 %v542_v59, %s639_s0 }
 0x125   :  { %350 = vrot.lane.b32.xlu0 %v544_v54, %s639_s0  ;;  %s640_s0 = smov [#allocation2]  }
 0x126   :  { %s484_s17 = sshll.u32 %s640_s0, 4  ;;  %s485_s17 = int_to_ptr.vmem [resolvable:$true] %s484_s17 }
 0x127   :  { %s615_s19 = scalar_lea.vmem %s485_s17, 16  ;;  %s619_s20 = scalar_lea.vmem %s485_s17, 32 }
 0x128   :  { %p616_p1 = scmp.ne.s32.totalorder %s485_s17, %s615_s19  ;;  %p620_p2 = scmp.lt.s32.totalorder %s485_s17, %s485_s17 }
 0x129   :  { %p621_p3 = scmp.lt.s32.totalorder %s619_s20, %s615_s19 }
 0x12b   :  { %p622_p4 = por %p621_p3, %p620_p2 }
 0x12d   :  { %p623_p5 = pnand %p622_p4, %p616_p1 }
 0x158   :  { %v321_v49 = vpop.permute.xlu1 %320 }
 0x159   :  { %369 = vst.msk [vmem:[%s1037_s4] sm:$0xf] %vm368_vm4, %v321_v49 }
 0x15c   :  { %v323_v2 = vpop.permute.xlu1 %322 }
 0x15d   :  { %370 = vst.msk [vmem:[%s1037_s4 + $0x4] sm:$0xf] %vm368_vm4, %v323_v2 }
 0x160   :  { %v327_v50 = vpop.permute.xlu1 %326 }
 0x161   :  { %372 = vst.msk [vmem:[%s1037_s4 + $0xc] sm:$0xf] %vm368_vm4, %v327_v50 }
 0x164   :  { %v329_v5 = vpop.permute.xlu1 %328 }
 0x165   :  { %373 = vst.msk [vmem:[%s1037_s4 + $0x10] sm:$0xf] %vm368_vm4, %v329_v5 }
 0x168   :  { %v331_v6 = vpop.permute.xlu1 %330 }
 0x169   :  { %374 = vst.msk [vmem:[%s1037_s4 + $0x14] sm:$0xf] %vm368_vm4, %v331_v6 }
 0x16c   :  { %v333_v10 = vpop.permute.xlu1 %332 }
 0x16d   :  { %375 = vst.msk [vmem:[%s1037_s4 + $0x18] sm:$0xf] %vm368_vm4, %v333_v10 }
 0x170   :  { %v335_v11 = vpop.permute.xlu1 %334 }
 0x171   :  { %376 = vst.msk [vmem:[%s1037_s4 + $0x1c] sm:$0xf] %vm368_vm4, %v335_v11 }
 0x174   :  { %v337_v12 = vpop.permute.xlu1 %336 }
 0x175   :  { %377 = vst.msk [vmem:[%s1037_s4 + $0x20] sm:$0xf] %vm368_vm4, %v337_v12 }
 0x178   :  { %v341_v13 = vpop.permute.xlu1 %340 }
 0x179   :  { %379 = vst.msk [vmem:[%s1037_s4 + $0x28] sm:$0xf] %vm368_vm4, %v341_v13 }
 0x17c   :  { %v345_v14 = vpop.permute.xlu1 %344 }
 0x17d   :  { %381 = vst.msk [vmem:[%s1037_s4 + $0x30] sm:$0xf] %vm368_vm4, %v345_v14 }
 0x180   :  { %v349_v15 = vpop.permute.xlu1 %348 }
 0x181   :  { %383 = vst.msk [vmem:[%s1037_s4 + $0x38] sm:$0xf] %vm368_vm4, %v349_v15 }
 0x188   :  { %v418_v16 = vpop.xlane.xlu0 %417 }
 0x189   :  { %v419_v17 = vrot.slane %v418_v16, 4 }
 0x18b   :  { %v420_v18 = vmax.f32 %v418_v16, %v419_v17 }
 0x18c   :  { %v459_v19 = vpop.xlane.xlu0 %458 }
 0x18d   :  { %v421_v20 = vrot.slane %v420_v18, 2  ;;  %v460_v21 = vrot.slane %v459_v19, 4 }
 0x18f   :  { %v461_v23 = vmax.f32 %v459_v19, %v460_v21  ;;  %v422_v24 = vmax.f32 %v420_v18, %v421_v20 }
 0x190   :  { %v325_v25 = vpop.permute.xlu0 %324 }
 0x191   :  { %v462_v26 = vrot.slane %v461_v23, 2  ;;  %371 = vst.msk [vmem:[%s1037_s4 + $0x8] sm:$0xf] %vm368_vm4, %v325_v25  ;;  %v423_v27 = vrot.slane %v422_v24, 1 }
 0x193   :  { %v424_v28 = vmax.f32 %v422_v24, %v423_v27  ;;  %v463_v29 = vmax.f32 %v461_v23, %v462_v26 }
 0x194   :  { %v339_v30 = vpop.permute.xlu0 %338 }
 0x195   :  { %378 = vst.msk [vmem:[%s1037_s4 + $0x24] sm:$0xf] %vm368_vm4, %v339_v30  ;;  %v464_v31 = vrot.slane %v463_v29, 1 }
 0x196   :  { %609 = vpush %v424_v28 }
 0x197   :  { %v465_v32 = vmax.f32 %v463_v29, %v464_v31 }
 0x198   :  { %v343_v35 = vpop.permute.xlu0 %342 }
 0x199   :  { %380 = vst.msk [vmem:[%s1037_s4 + $0x2c] sm:$0xf] %vm368_vm4, %v343_v35 }
 0x19a   :  { %611 = vpush %v465_v32 }
 0x19c   :  { %v347_v36 = vpop.permute.xlu0 %346 }
 0x19d   :  { %382 = vst.msk [vmem:[%s1037_s4 + $0x34] sm:$0xf] %vm368_vm4, %v347_v36 }
 0x1a0   :  { %v351_v37 = vpop.permute.xlu0 %350 }
 0x1a1   :  { %384 = vst.msk [vmem:[%s1037_s4 + $0x3c] sm:$0xf] %vm368_vm4, %v351_v37 }
 0x1c7   :  { %s610_s14 = spop %609 }
 0x1cb   :  { %s612_s15 = spop %611 }
 0x1cc   :  { %s467_s16 = sadd.f32 %s612_s15, %s610_s14 }
 0x1ce   :  { %p468_p0 = scmp.gt.f32.partialorder %s467_s16, 0.0  ;;  %s469_s18 = smul.f32 0.01, %s467_s16 }
 0x1d0   :  { %s1040_s16 = smov (!%p468_p0, %s467_s16), %s469_s18 }
 0x1d1   :  { %v471_v22 = vstv %s1040_s16 }
 0x1d2   :  { %473 = vst.msk [vmem:[#allocation2] sm:$0x1] %vm472_vm5, %v471_v22 }
 0x1d3   :  { %626 = shalt.err (!%p623_p5)
}
 0x1d4   :  { %s627_s22 = scalar_lea.hbm %s1038_s5, 16 }
 0x1d5   :  { %p628_p6 = scmp.ne.s32.totalorder %s1038_s5, %s627_s22  ;;  %p631_p7 = scmp.lt.u32.totalorder %s627_s22, %s1038_s5 }
 0x1d7   :  { %p633_p8 = pnand %p631_p7, %p628_p6 }
 0x1d9   :  { %636 = shalt.err (!%p633_p8)
}
 0x1da   :  { %487 = dma.vmem_to_hbm [thread:$0]  %s485_s17, 16, %s1038_s5, [#allocation3]  }
 0x1db   :  { %637 = dma.done.wait [#allocation3], 16  }
 0x1dc   :  { %638 = vsyncadd [#allocation3], 4294967280 }
 0x1dd   :  { %495 = vsyncpa [#allocation3], 1 }

</bundles_post_ra>
